<compile_context>
chip_gen: v6e
topology: v6e:2x2x1
jax: 0.10.0
libtpu: 0.0.40
codegen_flags: <defaults>
</compile_context>

<pallas_src>
import jax
import jax.numpy as jnp
from jax import lax
from jax.experimental import pallas as pl
from jax.experimental.pallas import tpu as pltpu

_LANE = 128
_SUBLANE = 8
_BLOCK_ROWS_MAX = 2048        # (2048, 128) f32 block = 1 MiB per stream
_NUM_CORES = 2                # megacore sharding on v7x; harmless on 1-TC chips


def _to_slab(x):
    """Flatten to a lane-dense (rows, 128) slab; pad only a <=1023-element tail."""
    flat = jnp.asarray(x).reshape(-1)
    n = flat.shape[0]
    pad = (-n) % (_SUBLANE * _LANE)
    if pad:
        flat = jnp.pad(flat, (0, pad))
    return flat.reshape(-1, _LANE)


# ---------------------------------------------------------------------------
# Reduce-only kernel (used for reduction in {'sum', 'mean'})
# ---------------------------------------------------------------------------

def _make_reduce_kernel(has_weight, need_mask, block_rows, rows, bpc):
    groups = block_rows // _SUBLANE

    def kernel(*refs):
        if has_weight:
            p_ref, t_ref, w_ref, sum_ref = refs
        else:
            p_ref, t_ref, sum_ref = refs
            w_ref = None

        c = pl.program_id(0)          # core / parallel axis
        j = pl.program_id(1)          # reduction axis (arbitrary)

        @pl.when(j == 0)
        def _():
            sum_ref[...] = jnp.zeros_like(sum_ref)

        p = p_ref[...].astype(jnp.float32)
        t = t_ref[...].astype(jnp.float32)
        loss = jnp.abs(p - t)
        if has_weight:
            loss = loss * w_ref[...].astype(jnp.float32)

        if need_mask:
            # Unclamped global block id; rows beyond the real array (or blocks that
            # were clamped by the index_map) contribute exactly zero.
            g = c * bpc + j
            row_ids = g * block_rows + lax.broadcasted_iota(
                jnp.int32, (block_rows, _LANE), 0)
            loss = jnp.where(row_ids < rows, loss, 0.0)

        # Sublane-group partial sum: pure vreg (VPU) adds into an (8,128) accumulator
        # resident in the output block; the single full reduce happens in the wrapper.
        partial = loss.reshape(groups, _SUBLANE, _LANE).sum(axis=0)
        sum_ref[...] += partial

    return kernel


def _run_reduce(p2, t2, w2):
    """p2/t2/(w2) are (rows, 128) slabs of equal row count. Returns f32 scalar sum."""
    rows = p2.shape[0]                         # multiple of 8 by construction
    block_rows = min(_BLOCK_ROWS_MAX, rows)
    total_blocks = pl.cdiv(rows, block_rows)
    num_cores = min(_NUM_CORES, total_blocks)  # don't spin up dummy core iterations
    bpc = pl.cdiv(total_blocks, num_cores)     # blocks per core
    need_mask = (num_cores * bpc * block_rows) != rows
    max_block = total_blocks - 1
    has_weight = w2 is not None

    def in_map(c, j):
        g = c * bpc + j
        return (jnp.minimum(g, max_block), 0)  # clamp fully-OOB blocks (masked to 0)

    in_spec = pl.BlockSpec((block_rows, _LANE), in_map)
    in_specs = [in_spec, in_spec] + ([in_spec] if has_weight else [])
    out_spec = pl.BlockSpec((_SUBLANE, _LANE), lambda c, j: (c, 0))

    kernel = _make_reduce_kernel(has_weight, need_mask, block_rows, rows, bpc)
    args = (p2, t2) + ((w2,) if has_weight else ())

    partials = pl.pallas_call(
        kernel,
        out_shape=jax.ShapeDtypeStruct((num_cores * _SUBLANE, _LANE), jnp.float32),
        grid_spec=pltpu.PrefetchScalarGridSpec(
            num_scalar_prefetch=0,
            grid=(num_cores, bpc),
            in_specs=in_specs,
            out_specs=out_spec,
        ),
        compiler_params=pltpu.CompilerParams(
            dimension_semantics=("parallel", "arbitrary")),
    )(*args)

    return jnp.sum(partials)                   # tiny (<=2048-element) wrapper reduce


# ---------------------------------------------------------------------------
# Elementwise-only kernel (used for reduction == 'none')
# ---------------------------------------------------------------------------

def _make_elem_kernel(has_weight, scale):
    def kernel(*refs):
        if has_weight:
            p_ref, t_ref, w_ref, o_ref = refs
        else:
            p_ref, t_ref, o_ref = refs
            w_ref = None

        p = p_ref[...].astype(jnp.float32)
        t = t_ref[...].astype(jnp.float32)
        loss = jnp.abs(p - t)
        if has_weight:
            loss = loss * w_ref[...].astype(jnp.float32)
        if scale != 1.0:
            loss = loss * jnp.float32(scale)   # fold loss_weight into the kernel
        o_ref[...] = loss.astype(o_ref.dtype)

    return kernel


def _run_elem(p2, t2, w2, out_dtype, scale):
    rows = p2.shape[0]
    block_rows = min(_BLOCK_ROWS_MAX, rows)
    total_blocks = pl.cdiv(rows, block_rows)
    has_weight = w2 is not None

    spec = pl.BlockSpec((block_rows, _LANE), lambda i: (i, 0))
    in_specs = [spec, spec] + ([spec] if has_weight else [])
    args = (p2, t2) + ((w2,) if has_weight else ())

    return pl.pallas_call(
        _make_elem_kernel(has_weight, scale),
        out_shape=jax.ShapeDtypeStruct((rows, _LANE), out_dtype),
        grid_spec=pltpu.PrefetchScalarGridSpec(
            num_scalar_prefetch=0,
            grid=(total_blocks,),
            in_specs=in_specs,
            out_specs=spec,
        ),
        compiler_params=pltpu.CompilerParams(
            dimension_semantics=("parallel",)),
    )(*args)


# ---------------------------------------------------------------------------
# Module wrapper
# ---------------------------------------------------------------------------

class MyLossPallas:
    def __init__(self, reduction='mean', loss_weight=1.0):
        assert reduction in ('none', 'mean', 'sum')
        self.reduction = reduction
        self.loss_weight = float(loss_weight)

    def __call__(self, pred, target, weight=None, avg_factor=None,
                 reduction_override=None):
        assert reduction_override in (None, 'none', 'mean', 'sum')
        reduction = reduction_override if reduction_override else self.reduction

        pred = jnp.asarray(pred)
        target = jnp.asarray(target)
        assert pred.shape == target.shape and pred.size > 0

        orig_shape = pred.shape
        n = pred.size

        p2 = _to_slab(pred)
        t2 = _to_slab(target)
        w2 = _to_slab(weight) if weight is not None else None

        if reduction == 'none':
            out_dtype = jnp.result_type(pred.dtype, target.dtype)
            if weight is not None:
                out_dtype = jnp.result_type(out_dtype, jnp.asarray(weight).dtype)
            elem = _run_elem(p2, t2, w2, out_dtype, self.loss_weight)
            flat = elem.reshape(-1)
            if flat.shape[0] != n:
                flat = flat[:n]
            return flat.reshape(orig_shape)
        else:
            if avg_factor is not None and reduction == 'sum':
                raise ValueError('avg_factor can not be used with reduction="sum"')
            total = _run_reduce(p2, t2, w2)
            if reduction == 'sum':
                loss = total
            else:  # 'mean'
                denom = jnp.float32(avg_factor) if avg_factor is not None else jnp.float32(n)
                loss = total / denom
            return self.loss_weight * loss


if __name__ == "__main__":
    key = jax.random.PRNGKey(0)
    k1, k2, k3, k4, k5 = jax.random.split(key, 5)

    # NCHW-like inputs: batch=2, channels=4, spatial=16x16
    pred = jax.random.normal(k1, (2, 4, 16, 16), dtype=jnp.float32)
    target = jax.random.normal(k2, (2, 4, 16, 16), dtype=jnp.float32)
    weight = (jax.random.uniform(k3, (2, 4, 16, 16)) > 0.5).astype(jnp.float32)

    loss_mod = MyLossPallas(reduction='mean', loss_weight=1.0)

    out_mean = loss_mod(pred, target)                                       # mean, no weight
    out_sum = loss_mod(pred, target, weight=weight, reduction_override='sum')
    out_none = loss_mod(pred, target, weight=weight, reduction_override='none')
    out_avg = loss_mod(pred, target, weight=weight, avg_factor=123.0)

    # non-lane-aligned size exercises the clamped/masked tail path
    pu = jax.random.normal(k4, (3, 5, 7, 11), dtype=jnp.float32)
    tu = jax.random.normal(k5, (3, 5, 7, 11), dtype=jnp.float32)
    out_u_sum = loss_mod(pu, tu, reduction_override='sum')
    out_u_none = loss_mod(pu, tu, reduction_override='none')

    jax.block_until_ready((out_mean, out_sum, out_none, out_avg,
                           out_u_sum, out_u_none))

    # reference checks against plain JAX
    ref_mean = jnp.mean(jnp.abs(pred - target))
    ref_sum = jnp.sum(jnp.abs(pred - target) * weight)
    ref_none = jnp.abs(pred - target) * weight
    ref_avg = jnp.sum(jnp.abs(pred - target) * weight) / 123.0
    ref_u_sum = jnp.sum(jnp.abs(pu - tu))
    ref_u_none = jnp.abs(pu - tu)

    assert jnp.allclose(out_mean, ref_mean, rtol=1e-5, atol=1e-5)
    assert jnp.allclose(out_sum, ref_sum, rtol=1e-5, atol=1e-5)
    assert jnp.allclose(out_none, ref_none, rtol=1e-5, atol=1e-5)
    assert jnp.allclose(out_avg, ref_avg, rtol=1e-5, atol=1e-5)
    assert jnp.allclose(out_u_sum, ref_u_sum, rtol=1e-5, atol=1e-5)
    assert jnp.allclose(out_u_none, ref_u_none, rtol=1e-5, atol=1e-5)

    print("KERNEL_OK")
</pallas_src>

<mosaic_0001>
module attributes {stable_mosaic.version = 11 : i64} {
  func.func @kernel(%arg0: i32, %arg1: i32, %arg2: memref<16x128xf32, #tpu.memory_space<vmem>>, %arg3: memref<16x128xf32, #tpu.memory_space<vmem>>, %arg4: memref<8x128xf32, #tpu.memory_space<vmem>>) attributes {dimension_semantics = [#tpu.dimension_semantics<parallel>, #tpu.dimension_semantics<arbitrary>], iteration_bounds = array<i64: 1, 1>, scalar_prefetch = 0 : i64, scratch_operands = 0 : i64, tpu.core_type = #tpu.core_type<tc>, window_params = [{transform_indices = @transform_0, window_bounds = array<i64: 16, 128>}, {transform_indices = @transform_1, window_bounds = array<i64: 16, 128>}, {transform_indices = @transform_2, window_bounds = array<i64: 8, 128>}]} {
    %c0_i32 = arith.constant 0 : i32
    %0 = arith.cmpi eq, %arg1, %c0_i32 : i32
    %1 = arith.extui %0 : i1 to i32
    %c0_i32_0 = arith.constant 0 : i32
    %2 = arith.cmpi ne, %1, %c0_i32_0 : i32
    scf.if %2 {
      %cst_8 = arith.constant 0.000000e+00 : f32
      %12 = vector.broadcast %cst_8 : f32 to vector<8x128xf32>
      %c0_9 = arith.constant 0 : index
      %c0_10 = arith.constant 0 : index
      %13 = vector.load %arg4[%c0_9, %c0_10] : memref<8x128xf32, #tpu.memory_space<vmem>>, vector<8x128xf32>
      tpu.vector_store %arg4[%c0_9, %c0_10], %12 {strides = array<i32>} : memref<8x128xf32, #tpu.memory_space<vmem>>, vector<8x128xf32>,
    } else {
    }
    %c0 = arith.constant 0 : index
    %c0_1 = arith.constant 0 : index
    %3 = vector.load %arg2[%c0, %c0_1] : memref<16x128xf32, #tpu.memory_space<vmem>>, vector<16x128xf32>
    %c0_2 = arith.constant 0 : index
    %c0_3 = arith.constant 0 : index
    %4 = vector.load %arg3[%c0_2, %c0_3] : memref<16x128xf32, #tpu.memory_space<vmem>>, vector<16x128xf32>
    %5 = arith.subf %3, %4 : vector<16x128xf32>
    %6 = math.absf %5 : vector<16x128xf32>
    %7 = vector.shape_cast %6 : vector<16x128xf32> to vector<2x8x128xf32>
    %cst = arith.constant dense<0.000000e+00> : vector<8x128xf32>
    %8 = vector.multi_reduction <add>, %7, %cst [0] : vector<2x8x128xf32> to vector<8x128xf32>
    %c0_4 = arith.constant 0 : index
    %c0_5 = arith.constant 0 : index
    %9 = vector.load %arg4[%c0_4, %c0_5] : memref<8x128xf32, #tpu.memory_space<vmem>>, vector<8x128xf32>
    %10 = arith.addf %9, %8 : vector<8x128xf32>
    %c0_6 = arith.constant 0 : index
    %c0_7 = arith.constant 0 : index
    %11 = vector.load %arg4[%c0_6, %c0_7] : memref<8x128xf32, #tpu.memory_space<vmem>>, vector<8x128xf32>
    tpu.vector_store %arg4[%c0_6, %c0_7], %10 {strides = array<i32>} : memref<8x128xf32, #tpu.memory_space<vmem>>, vector<8x128xf32>,
    return
  }
  func.func @transform_0(%arg0: i32, %arg1: i32) -> (i32, i32) {
    %c1_i32 = arith.constant 1 : i32
    %0 = arith.muli %arg0, %c1_i32 : i32
    %1 = arith.addi %0, %arg1 : i32
    %c0_i32 = arith.constant 0 : i32
    %2 = arith.minsi %1, %c0_i32 : i32
    %c0_i32_0 = arith.constant 0 : i32
    %c0_i32_1 = arith.constant 0 : i32
    return %2, %c0_i32_0 : i32, i32
  }
  func.func @transform_1(%arg0: i32, %arg1: i32) -> (i32, i32) {
    %c1_i32 = arith.constant 1 : i32
    %0 = arith.muli %arg0, %c1_i32 : i32
    %1 = arith.addi %0, %arg1 : i32
    %c0_i32 = arith.constant 0 : i32
    %2 = arith.minsi %1, %c0_i32 : i32
    %c0_i32_0 = arith.constant 0 : i32
    %c0_i32_1 = arith.constant 0 : i32
    return %2, %c0_i32_0 : i32, i32
  }
  func.func @transform_2(%arg0: i32, %arg1: i32) -> (i32, i32) {
    %c0_i32 = arith.constant 0 : i32
    %c0_i32_0 = arith.constant 0 : i32
    return %arg0, %c0_i32 : i32, i32
  }
}

</mosaic_0001>

<bundles_post_ra>
// kernel: tpu_custom_call.1
= control target key start
LH: loop header
LB: loop body
LE: loop exit
PB: predicated region body
PF: predicated region fallthrough
CT: control target
= control target key end

     0   :  { %7 = vsyncpa [#allocation3], 0  ;;  %s198_s0 = inlined_call_operand.hbm [shape: f32[16,128], index: 0, kind: input, shape index: {}]   ;;  %s199_s1 = inlined_call_operand.hbm [shape: f32[16,128], index: 1, kind: input, shape index: {}]   ;;  %s200_s2 = inlined_call_operand.hbm [shape: f32[8,128], index: 2, kind: output, shape index: {}]  }
   0x1   :  { %8 = vsyncpa [#allocation6], 0 }
   0x2   :  { %9 = vsyncpa [#allocation4], 0  ;;  %s169_s9 = smov [#allocation2]  }
   0x3   :  { %s21_s10 = sshll.u32 %s169_s9, 4  ;;  %s22_s10 = int_to_ptr.vmem [resolvable:$true] %s21_s10 }
   0x4   :  { %s111_s11 = scalar_lea.vmem %s22_s10, 256  ;;  %p116_p1 = scmp.lt.s32.totalorder %s22_s10, %s22_s10 }
   0x5   :  { %p112_p0 = scmp.ne.s32.totalorder %s22_s10, %s111_s11  ;;  %p117_p2 = scmp.lt.s32.totalorder %s111_s11, %s111_s11 }
   0x7   :  { %p118_p3 = por %p117_p2, %p116_p1 }
   0x9   :  { %p119_p4 = pnand %p118_p3, %p112_p0 }
   0xb   :  { %122 = shalt.err (!%p119_p4)
}
   0xc   :  { %s170_s12 = smov 128   ;;  %s171_s13 = smov 8  }
   0xd   :  { %27 = dma.hbm_to_vmem [thread:$0]  %s198_s0, 256, %s22_s10, [#allocation3], %s170_s12, %s170_s12, %s171_s13  }
   0xe   :  { %s172_s16 = smov [#allocation5]  }
   0xf   :  { %s39_s17 = sshll.u32 %s172_s16, 4  ;;  %s40_s17 = int_to_ptr.vmem [resolvable:$true] %s39_s17 }
  0x10   :  { %s131_s18 = scalar_lea.vmem %s40_s17, 256  ;;  %p136_p6 = scmp.lt.s32.totalorder %s40_s17, %s40_s17 }
  0x11   :  { %p132_p5 = scmp.ne.s32.totalorder %s40_s17, %s131_s18  ;;  %p137_p7 = scmp.lt.s32.totalorder %s131_s18, %s131_s18 }
  0x13   :  { %p138_p8 = por %p137_p7, %p136_p6 }
  0x15   :  { %p139_p9 = pnand %p138_p8, %p132_p5 }
  0x17   :  { %142 = shalt.err (!%p139_p9)
}
  0x18   :  { %45 = dma.hbm_to_vmem [thread:$0]  %s199_s1, 256, %s40_s17, [#allocation6], %s170_s12, %s170_s12, %s171_s13  }
  0x19   :  { %163 = dma.done.wait [#allocation3], 256  }
  0x1a   :  { %164 = vsyncadd [#allocation3], 4294967040 }
  0x1b   :  { %165 = dma.done.wait [#allocation6], 256  }
  0x1c   :  { %166 = vsyncadd [#allocation6], 4294967040  ;;  %v65_v0 = vld [vmem:[#allocation2] sm:$0xff]  ;;  %v66_v1 = vld [vmem:[#allocation2 + $0x8] sm:$0xff]  ;;  %s173_s0 = smov [#allocation7]  }
  0x1d   :  { %v67_v2 = vld [vmem:[#allocation5] sm:$0xff]  ;;  %v68_v3 = vld [vmem:[#allocation5 + $0x8] sm:$0xff]  ;;  %s83_s21 = sshll.u32 %s173_s0, 4  ;;  %s84_s21 = int_to_ptr.vmem [resolvable:$true] %s83_s21 }
  0x1e   :  { %v69_v4 = vsub.f32 %v65_v0, %v67_v2  ;;  %v70_v5 = vsub.f32 %v66_v1, %v68_v3  ;;  %s143_s22 = scalar_lea.vmem %s84_s21, 128  ;;  %p148_p11 = scmp.lt.s32.totalorder %s84_s21, %s84_s21 }
  0x1f   :  { %p144_p10 = scmp.ne.s32.totalorder %s84_s21, %s143_s22  ;;  %p149_p12 = scmp.lt.s32.totalorder %s143_s22, %s143_s22 }
  0x20   :  { %v71_v6 = vand.u32 2147483647, %v69_v4  ;;  %v72_v7 = vand.u32 2147483647, %v70_v5 }
  0x21   :  { %p150_p13 = por %p149_p12, %p148_p11 }
  0x22   :  { %v73_v8 = vadd.f32 %v72_v7, %v71_v6 }
  0x23   :  { %p151_p0 = pnand %p150_p13, %p144_p10 }
  0x24   :  { %76 = vst [vmem:[#allocation7] sm:$0xff] %v73_v8 }
  0x25   :  { %154 = shalt.err (!%p151_p0)
}
  0x26   :  { %86 = dma.vmem_to_hbm [thread:$0]  %s84_s21, 128, %s200_s2, [#allocation4]  }
  0x27   :  { %167 = dma.done.wait [#allocation4], 128  }
  0x28   :  { %168 = vsyncadd [#allocation4], 4294967168 }
  0x29   :  { %90 = vsyncpa [#allocation3], 1 }
  0x2a   :  { %91 = vsyncpa [#allocation6], 1 }
  0x2b   :  { %92 = vsyncpa [#allocation4], 1 }

</bundles_post_ra>
